<compile_context>
chip_gen: v6e
topology: v6e:2x2x1
jax: 0.10.0
libtpu: 0.0.40
codegen_flags: <defaults>
</compile_context>

<pallas_src>
import jax
import jax.numpy as jnp
from jax.experimental import pallas as pl
from jax.experimental.pallas import tpu as pltpu


N_OUT = 3 + 3 + 9 * 3      # recipe(3) | table(3) | 9 layout heads x 3  = 33 logits
N_OUT_PAD = 128            # lane-dense output slab (zero-padded head)


def _round_up(x, m):
    return (x + m - 1) // m * m


def _subgoal_kernel(x_ref, w1_ref, b1_ref, w2_ref, b2_ref, wh_ref, bh_ref, out_ref):
    # x_ref: (tn, H) tile of flattened latents (compute dtype: bf16 or f32).
    x = x_ref[...]
    # MLP layer 1: Linear(H -> H/2) + ReLU  (MXU in compute dtype, f32 accumulate, f32 bias/ReLU)
    h1 = jnp.dot(x, w1_ref[...], preferred_element_type=jnp.float32) + b1_ref[...]
    h1 = jnp.maximum(h1, 0.0)
    # MLP layer 2: Linear(H/2 -> H/4)   (no activation, matches nn.Sequential)
    h2 = jnp.dot(h1.astype(w2_ref.dtype), w2_ref[...],
                 preferred_element_type=jnp.float32) + b2_ref[...]
    # Fused heads: Linear(H/4 -> 128 padded; first 33 = recipe|table|layout_0..8)
    logits = jnp.dot(h2.astype(wh_ref.dtype), wh_ref[...],
                     preferred_element_type=jnp.float32) + bh_ref[...]
    out_ref[...] = logits.astype(out_ref.dtype)


def _const_spec(shape, single_buffer):
    """BlockSpec for a grid-invariant (weight/bias) input.

    When the weights are big, request single buffering so the never-changing operand does not
    eat 2x VMEM (matters for large H on v7x's 64 MiB VMEM -> allows bigger row tiles).
    """
    index_map = lambda i: (0,) * len(shape)
    if single_buffer and hasattr(pl, "Buffered"):
        try:
            return pl.BlockSpec(shape, index_map, pipeline_mode=pl.Buffered(1))
        except Exception:
            pass
    return pl.BlockSpec(shape, index_map)


def subgoal_head_forward(tf_latent, params, *, row_tile=512, use_bf16=True):
    """tf_latent: (B, T, H) float32. Returns {'recipe': (B,T,3), 'table': (B,T,3), 'layout': (B,T,9,3)}.

    row_tile: pick 512-2048 on v6e/v7x (multiple of 256), 128-512 on v5e (multiple of 128).
    """
    B, T, H = tf_latent.shape
    N = B * T
    h2d, h4d = H // 2, H // 4

    compute_dtype = jnp.bfloat16 if use_bf16 else jnp.float32
    xbytes = jnp.dtype(compute_dtype).itemsize

    # Row tile: big enough to amortize ~0.35us/grid-step and fill the MXU M dimension,
    # but never bigger than the (8-aligned) row count for tiny inputs.
    tn = min(row_tile, _round_up(N, 8))
    n_pad = _round_up(N, tn)
    grid = (n_pad // tn,)

    # In production the latent would already live in bf16; here we cast wrapper-side so the
    # kernel's HBM activation read is half width.
    x = tf_latent.reshape(N, H).astype(compute_dtype)
    if n_pad != N:
        x = jnp.pad(x, ((0, n_pad - N), (0, 0)))

    # MXU operands in compute dtype; biases stay f32.
    w1 = params["w1"].astype(compute_dtype)
    w2 = params["w2"].astype(compute_dtype)
    b1 = params["b1"].astype(jnp.float32)
    b2 = params["b2"].astype(jnp.float32)
    # Zero-pad the fused head to a lane-dense 128-wide output (avoids masked vst on a 33-wide
    # block and an under-filled MXU N on the last matmul).
    wh = jnp.pad(params["wh"], ((0, 0), (0, N_OUT_PAD - N_OUT))).astype(compute_dtype)
    bh = jnp.pad(params["bh"], ((0, 0), (0, N_OUT_PAD - N_OUT))).astype(jnp.float32)

    weight_bytes = ((H * h2d + h2d * h4d + h4d * N_OUT_PAD) * xbytes
                    + (h2d + h4d + N_OUT_PAD) * 4)
    single_buffer_weights = weight_bytes >= (4 << 20)   # only bother when weights are big

    # VMEM budget (worst case: weights double-buffered) + headroom; set the scoped limit
    # explicitly instead of relying on the 32 MiB default.
    vmem_est = (2 * tn * H * xbytes              # double-buffered activation tiles
                + 2 * tn * N_OUT_PAD * 4         # double-buffered output tiles
                + (1 if single_buffer_weights else 2) * weight_bytes
                + tn * (h2d + h4d) * 4)          # in-kernel intermediates
    vmem_limit = int(min(max(vmem_est * 3 // 2 + (2 << 20), 32 << 20), 100 << 20))

    cost = pl.CostEstimate(
        flops=2 * n_pad * (H * h2d + h2d * h4d + h4d * N_OUT_PAD),
        transcendentals=0,
        bytes_accessed=n_pad * H * xbytes + weight_bytes + n_pad * N_OUT_PAD * 4,
    )

    in_specs = [pl.BlockSpec((tn, H), lambda i: (i, 0))] + [
        _const_spec(a.shape, single_buffer_weights) for a in (w1, b1, w2, b2, wh, bh)
    ]

    out = pl.pallas_call(
        _subgoal_kernel,
        out_shape=jax.ShapeDtypeStruct((n_pad, N_OUT_PAD), jnp.float32),
        grid_spec=pltpu.PrefetchScalarGridSpec(
            num_scalar_prefetch=0,
            grid=grid,
            in_specs=in_specs,
            out_specs=pl.BlockSpec((tn, N_OUT_PAD), lambda i: (i, 0)),
        ),
        compiler_params=pltpu.CompilerParams(
            dimension_semantics=("parallel",),   # independent row tiles -> both v7x TCs get work
            vmem_limit_bytes=vmem_limit,
        ),
        cost_estimate=cost,
    )(x, w1, b1, w2, b2, wh, bh)

    out = out[:N, :N_OUT]
    recipe = out[:, 0:3].reshape(B, T, 3)
    table = out[:, 3:6].reshape(B, T, 3)
    layout = out[:, 6:6 + 27].reshape(B, T, 9, 3)
    return {"recipe": recipe, "table": table, "layout": layout}


def init_params(key, hidsize):
    """Deterministic synthetic params matching SubgoalHead(hidsize, hierarchical_flag=False)."""
    h2 = hidsize // 2
    h4 = hidsize // 4
    ks = jax.random.split(key, 6)

    def lin(kw, kb, fan_in, fan_out):
        bound = 1.0 / jnp.sqrt(fan_in)
        w = jax.random.uniform(kw, (fan_in, fan_out), jnp.float32, -bound, bound)
        b = jax.random.uniform(kb, (1, fan_out), jnp.float32, -bound, bound)
        return w, b

    w1, b1 = lin(ks[0], ks[1], hidsize, h2)        # mlp[0]: Linear(H, H/2)
    w2, b2 = lin(ks[2], ks[3], h2, h4)             # mlp[2]: Linear(H/2, H/4)
    # fused heads: recipe(3) | table(3) | layout_0..8 (each 3)  -> 33 outputs
    wh, bh = lin(ks[4], ks[5], h4, N_OUT)
    return {"w1": w1, "b1": b1, "w2": w2, "b2": b2, "wh": wh, "bh": bh}


def reference_forward(tf_latent, params):
    """Pure-JAX f32 reference replicating the PyTorch forward."""
    x = tf_latent
    h1 = jnp.maximum(x @ params["w1"] + params["b1"][0], 0.0)
    h2 = h1 @ params["w2"] + params["b2"][0]
    out = h2 @ params["wh"] + params["bh"][0]
    B, T = x.shape[0], x.shape[1]
    return {
        "recipe": out[..., 0:3],
        "table": out[..., 3:6],
        "layout": out[..., 6:33].reshape(B, T, 9, 3),
    }


if __name__ == "__main__":
    key = jax.random.PRNGKey(0)
    k_param, k_x, k_x2 = jax.random.split(key, 3)

    B, T, hidsize = 2, 8, 32
    params = init_params(k_param, hidsize)
    tf_latent = jax.random.normal(k_x, (B, T, hidsize), jnp.float32)
    ref = reference_forward(tf_latent, params)

    # 1) f32 path: exact check of the fused kernel math (incl. lane-padded head + row padding).
    pred32 = subgoal_head_forward(tf_latent, params, use_bf16=False)
    pred32 = jax.tree_util.tree_map(jax.block_until_ready, pred32)
    for name in ("recipe", "table", "layout"):
        assert pred32[name].shape == ref[name].shape, (name, pred32[name].shape, ref[name].shape)
        assert jnp.allclose(pred32[name], ref[name], atol=1e-4, rtol=1e-4), name

    # 2) Default production path (bf16 MXU operands, f32 accumulation): loose tolerance vs f32 ref.
    pred16 = subgoal_head_forward(tf_latent, params)
    pred16 = jax.tree_util.tree_map(jax.block_until_ready, pred16)
    for name in ("recipe", "table", "layout"):
        assert pred16[name].shape == ref[name].shape, name
        assert jnp.allclose(pred16[name], ref[name], atol=8e-2, rtol=8e-2), name

    # 3) N not a multiple of the row tile -> exercises wrapper-side zero padding of rows.
    B2, T2 = 3, 7
    x2 = jax.random.normal(k_x2, (B2, T2, hidsize), jnp.float32)
    ref2 = reference_forward(x2, params)
    pred2 = subgoal_head_forward(x2, params, use_bf16=False)
    pred2 = jax.tree_util.tree_map(jax.block_until_ready, pred2)
    for name in ("recipe", "table", "layout"):
        assert jnp.allclose(pred2[name], ref2[name], atol=1e-4, rtol=1e-4), name

    print("KERNEL_OK")
</pallas_src>

<mosaic_0001>
module attributes {stable_mosaic.version = 11 : i64} {
  func.func @_subgoal_kernel(%arg0: i32, %arg1: memref<16x32xf32, #tpu.memory_space<vmem>>, %arg2: memref<32x16xf32, #tpu.memory_space<vmem>>, %arg3: memref<1x16xf32, #tpu.memory_space<vmem>>, %arg4: memref<16x8xf32, #tpu.memory_space<vmem>>, %arg5: memref<1x8xf32, #tpu.memory_space<vmem>>, %arg6: memref<8x128xf32, #tpu.memory_space<vmem>>, %arg7: memref<1x128xf32, #tpu.memory_space<vmem>>, %arg8: memref<16x128xf32, #tpu.memory_space<vmem>>) attributes {dimension_semantics = [#tpu.dimension_semantics<parallel>], iteration_bounds = array<i64: 1>, scalar_prefetch = 0 : i64, scratch_operands = 0 : i64, tpu.core_type = #tpu.core_type<tc>, window_params = [{transform_indices = @transform_0, window_bounds = array<i64: 16, 32>}, {pipeline_mode = #tpu.pipeline_mode<synchronous>, transform_indices = @transform_1, window_bounds = array<i64: 32, 16>}, {pipeline_mode = #tpu.pipeline_mode<synchronous>, transform_indices = @transform_2, window_bounds = array<i64: 1, 16>}, {pipeline_mode = #tpu.pipeline_mode<synchronous>, transform_indices = @transform_3, window_bounds = array<i64: 16, 8>}, {pipeline_mode = #tpu.pipeline_mode<synchronous>, transform_indices = @transform_4, window_bounds = array<i64: 1, 8>}, {pipeline_mode = #tpu.pipeline_mode<synchronous>, transform_indices = @transform_5, window_bounds = array<i64: 8, 128>}, {pipeline_mode = #tpu.pipeline_mode<synchronous>, transform_indices = @transform_6, window_bounds = array<i64: 1, 128>}, {transform_indices = @transform_7, window_bounds = array<i64: 16, 128>}]} {
    %c0 = arith.constant 0 : index
    %c0_0 = arith.constant 0 : index
    %0 = vector.load %arg1[%c0, %c0_0] : memref<16x32xf32, #tpu.memory_space<vmem>>, vector<16x32xf32>
    %c0_1 = arith.constant 0 : index
    %c0_2 = arith.constant 0 : index
    %1 = vector.load %arg2[%c0_1, %c0_2] : memref<32x16xf32, #tpu.memory_space<vmem>>, vector<32x16xf32>
    %cst = arith.constant dense<0.000000e+00> : vector<16x16xf32>
    %2 = tpu.matmul %0, %1, %cst {dimension_numbers = #tpu.dot_dimension_numbers<[1], [0], [0], [1], [0, 0, 1, 1], [], []>} : vector<16x32xf32>, vector<32x16xf32>, vector<16x16xf32> -> vector<16x16xf32>
    %c0_3 = arith.constant 0 : index
    %c0_4 = arith.constant 0 : index
    %3 = vector.load %arg3[%c0_3, %c0_4] : memref<1x16xf32, #tpu.memory_space<vmem>>, vector<1x16xf32>
    %4 = vector.broadcast %3 : vector<1x16xf32> to vector<16x16xf32>
    %5 = arith.addf %2, %4 : vector<16x16xf32>
    %cst_5 = arith.constant 0.000000e+00 : f32
    %6 = vector.broadcast %cst_5 : f32 to vector<16x16xf32>
    %7 = arith.maximumf %5, %6 : vector<16x16xf32>
    %c0_6 = arith.constant 0 : index
    %c0_7 = arith.constant 0 : index
    %8 = vector.load %arg4[%c0_6, %c0_7] : memref<16x8xf32, #tpu.memory_space<vmem>>, vector<16x8xf32>
    %cst_8 = arith.constant dense<0.000000e+00> : vector<16x8xf32>
    %9 = tpu.matmul %7, %8, %cst_8 {dimension_numbers = #tpu.dot_dimension_numbers<[1], [0], [0], [1], [0, 0, 1, 1], [], []>} : vector<16x16xf32>, vector<16x8xf32>, vector<16x8xf32> -> vector<16x8xf32>
    %c0_9 = arith.constant 0 : index
    %c0_10 = arith.constant 0 : index
    %10 = vector.load %arg5[%c0_9, %c0_10] : memref<1x8xf32, #tpu.memory_space<vmem>>, vector<1x8xf32>
    %11 = vector.broadcast %10 : vector<1x8xf32> to vector<16x8xf32>
    %12 = arith.addf %9, %11 : vector<16x8xf32>
    %c0_11 = arith.constant 0 : index
    %c0_12 = arith.constant 0 : index
    %13 = vector.load %arg6[%c0_11, %c0_12] : memref<8x128xf32, #tpu.memory_space<vmem>>, vector<8x128xf32>
    %cst_13 = arith.constant dense<0.000000e+00> : vector<16x128xf32>
    %14 = tpu.matmul %12, %13, %cst_13 {dimension_numbers = #tpu.dot_dimension_numbers<[1], [0], [0], [1], [0, 0, 1, 1], [], []>} : vector<16x8xf32>, vector<8x128xf32>, vector<16x128xf32> -> vector<16x128xf32>
    %c0_14 = arith.constant 0 : index
    %c0_15 = arith.constant 0 : index
    %15 = vector.load %arg7[%c0_14, %c0_15] : memref<1x128xf32, #tpu.memory_space<vmem>>, vector<1x128xf32>
    %16 = vector.broadcast %15 : vector<1x128xf32> to vector<16x128xf32>
    %17 = arith.addf %14, %16 : vector<16x128xf32>
    %c0_16 = arith.constant 0 : index
    %c0_17 = arith.constant 0 : index
    %18 = vector.load %arg8[%c0_16, %c0_17] : memref<16x128xf32, #tpu.memory_space<vmem>>, vector<16x128xf32>
    tpu.vector_store %arg8[%c0_16, %c0_17], %17 {strides = array<i32>} : memref<16x128xf32, #tpu.memory_space<vmem>>, vector<16x128xf32>,
    return
  }
  func.func @transform_0(%arg0: i32) -> (i32, i32) {
    %c0_i32 = arith.constant 0 : i32
    %c0_i32_0 = arith.constant 0 : i32
    return %arg0, %c0_i32 : i32, i32
  }
  func.func @transform_1(%arg0: i32) -> (i32, i32) {
    %c0_i32 = arith.constant 0 : i32
    %c0_i32_0 = arith.constant 0 : i32
    %c0_i32_1 = arith.constant 0 : i32
    return %c0_i32, %c0_i32_0 : i32, i32
  }
  func.func @transform_2(%arg0: i32) -> (i32, i32) {
    %c0_i32 = arith.constant 0 : i32
    %c0_i32_0 = arith.constant 0 : i32
    %c0_i32_1 = arith.constant 0 : i32
    return %c0_i32, %c0_i32_0 : i32, i32
  }
  func.func @transform_3(%arg0: i32) -> (i32, i32) {
    %c0_i32 = arith.constant 0 : i32
    %c0_i32_0 = arith.constant 0 : i32
    %c0_i32_1 = arith.constant 0 : i32
    return %c0_i32, %c0_i32_0 : i32, i32
  }
  func.func @transform_4(%arg0: i32) -> (i32, i32) {
    %c0_i32 = arith.constant 0 : i32
    %c0_i32_0 = arith.constant 0 : i32
    %c0_i32_1 = arith.constant 0 : i32
    return %c0_i32, %c0_i32_0 : i32, i32
  }
  func.func @transform_5(%arg0: i32) -> (i32, i32) {
    %c0_i32 = arith.constant 0 : i32
    %c0_i32_0 = arith.constant 0 : i32
    %c0_i32_1 = arith.constant 0 : i32
    return %c0_i32, %c0_i32_0 : i32, i32
  }
  func.func @transform_6(%arg0: i32) -> (i32, i32) {
    %c0_i32 = arith.constant 0 : i32
    %c0_i32_0 = arith.constant 0 : i32
    %c0_i32_1 = arith.constant 0 : i32
    return %c0_i32, %c0_i32_0 : i32, i32
  }
  func.func @transform_7(%arg0: i32) -> (i32, i32) {
    %c0_i32 = arith.constant 0 : i32
    %c0_i32_0 = arith.constant 0 : i32
    return %arg0, %c0_i32 : i32, i32
  }
}

</mosaic_0001>

<bundles_post_ra>
// kernel: tpu_custom_call.1
= control target key start
LH: loop header
LB: loop body
LE: loop exit
PB: predicated region body
PF: predicated region fallthrough
CT: control target
= control target key end

     0   :  { %vm40_vm0 = vcmask 261120   ;;  %s475_s0 = inlined_call_operand.vmem [shape: f32[16,32], index: 0, kind: input, shape index: {}]   ;;  %s476_s1 = inlined_call_operand.vmem [shape: f32[32,16], index: 1, kind: input, shape index: {}]   ;;  %s477_s2 = inlined_call_operand.vmem [shape: f32[1,16], index: 2, kind: input, shape index: {}]   ;;  %s478_s3 = inlined_call_operand.vmem [shape: f32[16,8], index: 3, kind: input, shape index: {}]   ;;  %s479_s4 = inlined_call_operand.vmem [shape: f32[1,8], index: 4, kind: input, shape index: {}]   ;;  %s480_s5 = inlined_call_operand.vmem [shape: f32[8,128], index: 5, kind: input, shape index: {}]   ;;  %s481_s6 = inlined_call_operand.vmem [shape: f32[1,128], index: 6, kind: input, shape index: {}]   ;;  %s482_s7 = inlined_call_operand.hbm [shape: f32[16,128], index: 7, kind: output, shape index: {}]  }
   0x1   :  { %v32_v0 = vld [vmem:[%s476_s1 + $0x18] sm:$0xff]  ;;  %v31_v1 = vld [vmem:[%s476_s1 + $0x10] sm:$0xff]  ;;  %v27_v2 = vld [vmem:[%s475_s0] sm:$0xff] }
   0x2   :  { %345 = vmatprep.subr.mxu0 %v32_v0  ;;  %v30_v3 = vld [vmem:[%s476_s1 + $0x8] sm:$0xff]  ;;  %353 = vmatprep.mubr.msk.f32.mxu0 %vm40_vm0, %v27_v2 }
   0x3   :  { %346 = vmatpush3.msra.mxu0 %v32_v0 }
   0x4   :  { %12 = vsyncpa [#allocation3], 0  ;;  %347 = vmatprep.subr.mxu0 %v31_v1  ;;  %v29_v4 = vld [vmem:[%s476_s1] sm:$0xff]  ;;  %v28_v5 = vld [vmem:[%s475_s0 + $0x8] sm:$0xff]  ;;  %vm133_vm1 = vcmask 130048   ;;  %vm223_vm2 = vcmask 64512  }
   0x5   :  { %348 = vmatpush3.msra.mxu0 %v31_v1  ;;  %v125_v6 = vld [vmem:[%s478_s3 + $0x8] sm:$0xff]  ;;  %v124_v7 = vld [vmem:[%s478_s3] sm:$0xff]  ;;  %s393_s21 = smov [#allocation2]  }
   0x6   :  { %349 = vmatprep.subr.mxu0 %v30_v3  ;;  %356 = vmatprep.subr.mxu1 %v125_v6  ;;  %v323_v8 = vld [vmem:[%s477_s2] ss:$0 sm:$0xff]  ;;  %s312_s22 = sshll.u32 %s393_s21, 4  ;;  %s313_s22 = int_to_ptr.vmem [resolvable:$true] %s312_s22 }
   0x7   :  { %350 = vmatpush3.msra.mxu0 %v30_v3  ;;  %357 = vmatpush3.msra.mxu1 %v125_v6  ;;  %v215_v15 = vld [vmem:[%s480_s5] sm:$0xff]  ;;  %p376_p1 = scmp.lt.s32.totalorder %s313_s22, %s313_s22 }
   0x8   :  { %351 = vmatprep.subr.mxu0 %v29_v4  ;;  %358 = vmatprep.subr.mxu1 %v124_v7  ;;  %v326_v17 = vld [vmem:[%s479_s4] ss:$0 sm:$0xff]  ;;  %s371_s4 = scalar_lea.vmem %s313_s22, 256 }
   0x9   :  { %352 = vmatpush3.msra.mxu0 %v29_v4  ;;  %359 = vmatpush3.msra.mxu1 %v124_v7  ;;  %v329_v21 = vld [vmem:[%s481_s6] ss:$0 sm:$0xff]  ;;  %p372_p0 = scmp.ne.s32.totalorder %s313_s22, %s371_s4  ;;  %p377_p2 = scmp.lt.s32.totalorder %s371_s4, %s371_s4 }
   0xa   :  { %354 = vmatmul.mubr.msk.f32.vlgmr.msra.gmra.mxu0 %vm40_vm0, %v28_v5  ;;  %363 = vmatprep.subr.mxu1 %v215_v15 }
   0xb   :  { %p378_p3 = por %p377_p2, %p376_p1 }
   0xd   :  { %p379_p4 = pnand %p378_p3, %p372_p0 }
  0xca   :  { %v355_v9 = vpop.f32.mrf.mxu0 }
  0xcb   :  { %v119_v10 = vadd.f32 %v355_v9, %v323_v8 }
  0xcc   :  { %v113_v11 = vpop.f32.mrf.mxu0 }
  0xcd   :  { %v114_v12 = vadd.f32 %v323_v8, %v113_v11  ;;  %v123_v14 = vmax.f32 %v119_v10, 0.0 }
  0xcf   :  { %v122_v13 = vmax.f32 %v114_v12, 0.0 }
  0xd1   :  { %360 = vmatprep.mubr.msk.f32.mxu1 %vm133_vm1, %v122_v13 }
  0xd2   :  { %361 = vmatmul.mubr.msk.f32.vlgmr.msra.gmra.mxu1 %vm133_vm1, %v123_v14 }
  0xd3   :  { %364 = vmatpush3.msra.mxu1 %v215_v15 }
 0x192   :  { %v362_v16 = vpop.f32.mrf.mxu1 }
 0x193   :  { %v212_v20 = vadd.f32 %v362_v16, %v326_v17 }
 0x194   :  { %v206_v18 = vpop.f32.mrf.mxu1 }
 0x195   :  { %v207_v19 = vadd.f32 %v326_v17, %v206_v18 }
 0x197   :  { %365 = vmatprep.mubr.msk.f32.mxu1 %vm223_vm2, %v207_v19 }
 0x198   :  { %366 = vmatmul.mubr.msk.f32.vlgmr.msra.gmra.mxu1 %vm223_vm2, %v212_v20 }
 0x258   :  { %v367_v22 = vpop.f32.mrf.mxu1 }
 0x259   :  { %v302_v23 = vadd.f32 %v367_v22, %v329_v21 }
 0x25a   :  { %v296_v24 = vpop.f32.mrf.mxu1 }
 0x25b   :  { %306 = vst [vmem:[#allocation2 + $0x8] sm:$0xff] %v302_v23  ;;  %v297_v25 = vadd.f32 %v329_v21, %v296_v24 }
 0x25d   :  { %305 = vst [vmem:[#allocation2] sm:$0xff] %v297_v25 }
 0x25e   :  { %382 = shalt.err (!%p379_p4)
}
 0x25f   :  { %s394_s5 = smov 128   ;;  %s395_s23 = smov 8  }
 0x260   :  { %318 = dma.vmem_to_hbm [thread:$0]  %s313_s22, 256, %s482_s7, [#allocation3], %s394_s5, %s394_s5, %s395_s23  }
 0x261   :  { %391 = dma.done.wait [#allocation3], 256  }
 0x262   :  { %392 = vsyncadd [#allocation3], 4294967040 }
 0x263   :  { %322 = vsyncpa [#allocation3], 1 }

</bundles_post_ra>
